<compile_context>
chip_gen: v5e
topology: v5e:2x2
jax: 0.10.0
libtpu: 0.0.40
codegen_flags: <defaults>
</compile_context>

<pallas_src>
import functools

import jax
import jax.numpy as jnp
from jax.experimental import pallas as pl
from jax.experimental.pallas import tpu as pltpu

LN_EPS = 1e-5   # torch.nn.LayerNorm default
LANE = 128


def _round_up(x, m):
    return (x + m - 1) // m * m


def _roi_gather_kernel(roi_ref, w_ref, b_ref, gamma_ref, beta_ref, out_ref, *,
                       hidden_dim, hidden_padded):
    # roi_ref:   (TILE_N, K)   streamed row tile, native dtype (MXU input)
    # w_ref:     (K, Hp)       fc weight, pre-transposed + H-padded, VMEM resident
    # b_ref:     (1, Hp) f32   fc bias      (padded lanes are 0)
    # gamma_ref: (1, Hp) f32   LN weight    (padded lanes are 0)
    # beta_ref:  (1, Hp) f32   LN bias      (padded lanes are 0)
    # out_ref:   (TILE_N, Hp)

    # Linear: f32 accumulation on the MXU, no VPU upcast of the operands.
    y = jnp.dot(roi_ref[...], w_ref[...], preferred_element_type=jnp.float32)
    y = y + b_ref[...]

    # LayerNorm over the *true* hidden width.  Padded columns of y are exactly
    # zero (zero weight columns + zero bias), so sums over the padded width
    # equal sums over the true width as long as we divide by hidden_dim and
    # mask the padded lanes out of the variance.
    inv_h = 1.0 / float(hidden_dim)
    mean = jnp.sum(y, axis=-1, keepdims=True) * inv_h
    centered = y - mean
    if hidden_padded:
        lane = jax.lax.broadcasted_iota(jnp.int32, centered.shape, 1)
        centered_m = jnp.where(lane < hidden_dim, centered, 0.0)
    else:
        centered_m = centered
    var = jnp.sum(centered_m * centered_m, axis=-1, keepdims=True) * inv_h
    rstd = jax.lax.rsqrt(var + LN_EPS)          # EUP slot, essentially free

    # gamma/beta padded lanes are 0, so padded output lanes come out as 0.
    y_out = centered * rstd * gamma_ref[...] + beta_ref[...]
    out_ref[...] = jnp.maximum(y_out, 0.0).astype(out_ref.dtype)


def prepare_roi_gather_params(params):
    """One-time parameter prep (call at init, NOT per forward).

    - transposes the fc weight to (K, H) so the kernel runs a plain
      (N,K) @ (K,H) MXU matmul (no per-call XLA transpose),
    - zero-pads the hidden dim up to a multiple of 128 for lane-dense stores,
    - reshapes bias / LN params to (1, Hp) f32 rows.
    """
    fc_w = jnp.asarray(params["fc_w"])           # (H, K) torch layout
    H, _ = fc_w.shape
    Hp = _round_up(H, LANE)
    pad = Hp - H

    w_t = jnp.transpose(fc_w)                    # (K, H), done once here
    if pad:
        w_t = jnp.pad(w_t, ((0, 0), (0, pad)))

    def _vec(v):
        v = jnp.asarray(v, jnp.float32).reshape(1, H)
        return jnp.pad(v, ((0, 0), (0, pad))) if pad else v

    return {
        "w_t": w_t,
        "b": _vec(params["fc_b"]),
        "gamma": _vec(params["ln_w"]),
        "beta": _vec(params["ln_b"]),
        "hidden_dim": H,
        "hidden_padded_dim": Hp,
    }


def _choose_tile_n(N, K, Hp, roi_itemsize):
    """Largest row tile whose working set (double-buffered roi in + out tiles
    plus the resident weight) fits comfortably inside the scoped-VMEM default
    on every generation (v5e: 16 MiB scoped, v7x: 64 MiB physical)."""
    n_pad = _round_up(N, 8)
    budget = 14 << 20
    resident = (K * Hp + 4 * Hp) * 4             # weight + bias/gamma/beta (f32)
    tile = 8
    for cand in (8, 16, 32, 64, 128, 256, 512, 1024):
        if cand > n_pad:
            break
        per_step = 2 * cand * (K * roi_itemsize + Hp * 4)   # in + out, 2 buffers each
        if resident + per_step <= budget:
            tile = cand
    return min(tile, n_pad)


def roi_gather_forward(roi_features, x, n_pos, prepared):
    """JAX/Pallas equivalent of ROIGather.forward.

    roi_features: (B, n_pos, num_sample, C)
    x:            (B, C, fH, fW)   -- only the batch size is used (as in PyTorch)
    prepared:     output of prepare_roi_gather_params
    Returns: (B * n_pos, H) float32
    """
    bs = x.shape[0]
    roi = roi_features.reshape(bs * n_pos, -1)   # (N, K), K ordered (sample_points, C)
    N, K = roi.shape
    H = prepared["hidden_dim"]
    Hp = prepared["hidden_padded_dim"]

    tile_n = _choose_tile_n(N, K, Hp, roi.dtype.itemsize)
    grid = (pl.cdiv(N, tile_n),)

    kernel = functools.partial(
        _roi_gather_kernel, hidden_dim=H, hidden_padded=(Hp != H))

    cost = pl.CostEstimate(
        flops=2 * N * K * Hp,
        transcendentals=N,                       # one rsqrt per row
        bytes_accessed=(N * K * roi.dtype.itemsize
                        + K * Hp * prepared["w_t"].dtype.itemsize
                        + 3 * Hp * 4
                        + N * Hp * 4),
    )

    out = pl.pallas_call(
        kernel,
        out_shape=jax.ShapeDtypeStruct((N, Hp), jnp.float32),
        grid_spec=pltpu.PrefetchScalarGridSpec(
            num_scalar_prefetch=0,
            grid=grid,
            in_specs=[
                pl.BlockSpec((tile_n, K), lambda i: (i, 0)),   # streamed row tiles
                pl.BlockSpec((K, Hp), lambda i: (0, 0)),       # resident weight
                pl.BlockSpec((1, Hp), lambda i: (0, 0)),       # bias
                pl.BlockSpec((1, Hp), lambda i: (0, 0)),       # ln gamma
                pl.BlockSpec((1, Hp), lambda i: (0, 0)),       # ln beta
            ],
            out_specs=pl.BlockSpec((tile_n, Hp), lambda i: (i, 0)),
        ),
        compiler_params=pltpu.CompilerParams(
            dimension_semantics=("parallel",)),  # shard row tiles across TCs on v7x
        cost_estimate=cost,
    )(roi, prepared["w_t"], prepared["b"], prepared["gamma"], prepared["beta"])

    if Hp != H:
        out = out[:, :H]
    return out


def _reference(roi_features, x, n_pos, params):
    """Pure-JAX reference for correctness check."""
    bs = x.shape[0]
    roi = roi_features.reshape(bs * n_pos, -1).astype(jnp.float32)
    y = roi @ params["fc_w"].T.astype(jnp.float32) + params["fc_b"]
    mean = jnp.mean(y, axis=-1, keepdims=True)
    var = jnp.mean((y - mean) ** 2, axis=-1, keepdims=True)
    y = (y - mean) / jnp.sqrt(var + LN_EPS)
    y = y * params["ln_w"] + params["ln_b"]
    return jnp.maximum(y, 0.0)


if __name__ == "__main__":
    # Small, consistent shapes:
    #   in_channels C = 4, sample_points = 8, fc_hidden_dim = 32
    #   batch B = 2, n_pos = 8  ->  N = 16, K = 32, H = 32 (padded to 128)
    B, n_pos, sample_points, C = 2, 8, 8, 4
    fc_hidden_dim = 32
    fH, fW = 16, 16
    K = sample_points * C

    key = jax.random.PRNGKey(0)
    k_roi, k_x, k_w, k_b, k_lw, k_lb = jax.random.split(key, 6)

    roi_features = jax.random.normal(k_roi, (B, n_pos, sample_points, C), dtype=jnp.float32)
    x = jax.random.normal(k_x, (B, C, fH, fW), dtype=jnp.float32)  # only batch size used

    # Deterministic parameter init (synthetic; shapes follow nn.Linear / nn.LayerNorm).
    params = {
        "fc_w": 0.05 * jax.random.normal(k_w, (fc_hidden_dim, K), dtype=jnp.float32),
        "fc_b": 0.01 * jax.random.normal(k_b, (fc_hidden_dim,), dtype=jnp.float32),
        "ln_w": 1.0 + 0.02 * jax.random.normal(k_lw, (fc_hidden_dim,), dtype=jnp.float32),
        "ln_b": 0.02 * jax.random.normal(k_lb, (fc_hidden_dim,), dtype=jnp.float32),
    }

    prepared = prepare_roi_gather_params(params)   # one-time, init-side prep
    out = roi_gather_forward(roi_features, x, n_pos, prepared)
    out = jax.block_until_ready(out)

    ref = _reference(roi_features, x, n_pos, params)
    assert out.shape == (B * n_pos, fc_hidden_dim), out.shape
    assert jnp.allclose(out, ref, atol=1e-5, rtol=1e-5), "mismatch vs reference"

    print("KERNEL_OK")
</pallas_src>

<mosaic_0001>
module attributes {stable_mosaic.version = 11 : i64} {
  func.func @_roi_gather_kernel(%arg0: i32, %arg1: memref<16x32xf32, #tpu.memory_space<vmem>>, %arg2: memref<32x128xf32, #tpu.memory_space<vmem>>, %arg3: memref<1x128xf32, #tpu.memory_space<vmem>>, %arg4: memref<1x128xf32, #tpu.memory_space<vmem>>, %arg5: memref<1x128xf32, #tpu.memory_space<vmem>>, %arg6: memref<16x128xf32, #tpu.memory_space<vmem>>) attributes {dimension_semantics = [#tpu.dimension_semantics<parallel>], iteration_bounds = array<i64: 1>, scalar_prefetch = 0 : i64, scratch_operands = 0 : i64, tpu.core_type = #tpu.core_type<tc>, window_params = [{transform_indices = @transform_0, window_bounds = array<i64: 16, 32>}, {pipeline_mode = #tpu.pipeline_mode<synchronous>, transform_indices = @transform_1, window_bounds = array<i64: 32, 128>}, {pipeline_mode = #tpu.pipeline_mode<synchronous>, transform_indices = @transform_2, window_bounds = array<i64: 1, 128>}, {pipeline_mode = #tpu.pipeline_mode<synchronous>, transform_indices = @transform_3, window_bounds = array<i64: 1, 128>}, {pipeline_mode = #tpu.pipeline_mode<synchronous>, transform_indices = @transform_4, window_bounds = array<i64: 1, 128>}, {transform_indices = @transform_5, window_bounds = array<i64: 16, 128>}]} {
    %c0 = arith.constant 0 : index
    %c0_0 = arith.constant 0 : index
    %0 = vector.load %arg1[%c0, %c0_0] : memref<16x32xf32, #tpu.memory_space<vmem>>, vector<16x32xf32>
    %c0_1 = arith.constant 0 : index
    %c0_2 = arith.constant 0 : index
    %1 = vector.load %arg2[%c0_1, %c0_2] : memref<32x128xf32, #tpu.memory_space<vmem>>, vector<32x128xf32>
    %cst = arith.constant dense<0.000000e+00> : vector<16x128xf32>
    %2 = tpu.matmul %0, %1, %cst {dimension_numbers = #tpu.dot_dimension_numbers<[1], [0], [0], [1], [0, 0, 1, 1], [], []>} : vector<16x32xf32>, vector<32x128xf32>, vector<16x128xf32> -> vector<16x128xf32>
    %c0_3 = arith.constant 0 : index
    %c0_4 = arith.constant 0 : index
    %3 = vector.load %arg3[%c0_3, %c0_4] : memref<1x128xf32, #tpu.memory_space<vmem>>, vector<1x128xf32>
    %4 = vector.broadcast %3 : vector<1x128xf32> to vector<16x128xf32>
    %5 = arith.addf %2, %4 : vector<16x128xf32>
    %cst_5 = arith.constant dense<0.000000e+00> : vector<16xf32>
    %6 = vector.multi_reduction <add>, %5, %cst_5 [1] : vector<16x128xf32> to vector<16xf32>
    %7 = vector.shape_cast %6 : vector<16xf32> to vector<16x1xf32>
    %cst_6 = arith.constant 3.125000e-02 : f32
    %8 = vector.broadcast %cst_6 : f32 to vector<16x1xf32>
    %9 = arith.mulf %7, %8 : vector<16x1xf32>
    %10 = vector.broadcast %9 : vector<16x1xf32> to vector<16x128xf32>
    %11 = arith.subf %5, %10 : vector<16x128xf32>
    %12 = tpu.iota {dimensions = array<i32: 1>} : vector<16x128xi32>
    %c32_i32 = arith.constant 32 : i32
    %13 = vector.broadcast %c32_i32 : i32 to vector<16x128xi32>
    %14 = arith.cmpi slt, %12, %13 : vector<16x128xi32>
    %cst_7 = arith.constant 0.000000e+00 : f32
    %15 = vector.broadcast %cst_7 : f32 to vector<16x128xf32>
    %16 = arith.select %14, %11, %15 : vector<16x128xi1>, vector<16x128xf32>
    %17 = arith.mulf %16, %16 : vector<16x128xf32>
    %cst_8 = arith.constant dense<0.000000e+00> : vector<16xf32>
    %18 = vector.multi_reduction <add>, %17, %cst_8 [1] : vector<16x128xf32> to vector<16xf32>
    %19 = vector.shape_cast %18 : vector<16xf32> to vector<16x1xf32>
    %cst_9 = arith.constant 3.125000e-02 : f32
    %20 = vector.broadcast %cst_9 : f32 to vector<16x1xf32>
    %21 = arith.mulf %19, %20 : vector<16x1xf32>
    %cst_10 = arith.constant 9.99999974E-6 : f32
    %22 = vector.broadcast %cst_10 : f32 to vector<16x1xf32>
    %23 = arith.addf %21, %22 : vector<16x1xf32>
    %24 = math.rsqrt %23 : vector<16x1xf32>
    %25 = vector.broadcast %24 : vector<16x1xf32> to vector<16x128xf32>
    %26 = arith.mulf %11, %25 : vector<16x128xf32>
    %c0_11 = arith.constant 0 : index
    %c0_12 = arith.constant 0 : index
    %27 = vector.load %arg4[%c0_11, %c0_12] : memref<1x128xf32, #tpu.memory_space<vmem>>, vector<1x128xf32>
    %28 = vector.broadcast %27 : vector<1x128xf32> to vector<16x128xf32>
    %29 = arith.mulf %26, %28 : vector<16x128xf32>
    %c0_13 = arith.constant 0 : index
    %c0_14 = arith.constant 0 : index
    %30 = vector.load %arg5[%c0_13, %c0_14] : memref<1x128xf32, #tpu.memory_space<vmem>>, vector<1x128xf32>
    %31 = vector.broadcast %30 : vector<1x128xf32> to vector<16x128xf32>
    %32 = arith.addf %29, %31 : vector<16x128xf32>
    %cst_15 = arith.constant 0.000000e+00 : f32
    %33 = vector.broadcast %cst_15 : f32 to vector<16x128xf32>
    %34 = arith.maximumf %32, %33 : vector<16x128xf32>
    %c0_16 = arith.constant 0 : index
    %c0_17 = arith.constant 0 : index
    %35 = vector.load %arg6[%c0_16, %c0_17] : memref<16x128xf32, #tpu.memory_space<vmem>>, vector<16x128xf32>
    tpu.vector_store %arg6[%c0_16, %c0_17], %34 {strides = array<i32>} : memref<16x128xf32, #tpu.memory_space<vmem>>, vector<16x128xf32>,
    return
  }
  func.func @transform_0(%arg0: i32) -> (i32, i32) {
    %c0_i32 = arith.constant 0 : i32
    %c0_i32_0 = arith.constant 0 : i32
    return %arg0, %c0_i32 : i32, i32
  }
  func.func @transform_1(%arg0: i32) -> (i32, i32) {
    %c0_i32 = arith.constant 0 : i32
    %c0_i32_0 = arith.constant 0 : i32
    %c0_i32_1 = arith.constant 0 : i32
    return %c0_i32, %c0_i32_0 : i32, i32
  }
  func.func @transform_2(%arg0: i32) -> (i32, i32) {
    %c0_i32 = arith.constant 0 : i32
    %c0_i32_0 = arith.constant 0 : i32
    %c0_i32_1 = arith.constant 0 : i32
    return %c0_i32, %c0_i32_0 : i32, i32
  }
  func.func @transform_3(%arg0: i32) -> (i32, i32) {
    %c0_i32 = arith.constant 0 : i32
    %c0_i32_0 = arith.constant 0 : i32
    %c0_i32_1 = arith.constant 0 : i32
    return %c0_i32, %c0_i32_0 : i32, i32
  }
  func.func @transform_4(%arg0: i32) -> (i32, i32) {
    %c0_i32 = arith.constant 0 : i32
    %c0_i32_0 = arith.constant 0 : i32
    %c0_i32_1 = arith.constant 0 : i32
    return %c0_i32, %c0_i32_0 : i32, i32
  }
  func.func @transform_5(%arg0: i32) -> (i32, i32) {
    %c0_i32 = arith.constant 0 : i32
    %c0_i32_0 = arith.constant 0 : i32
    return %arg0, %c0_i32 : i32, i32
  }
}

</mosaic_0001>

<bundles_post_ra>
// kernel: tpu_custom_call.1
= control target key start
LH: loop header
LB: loop body
LE: loop exit
PB: predicated region body
PF: predicated region fallthrough
CT: control target
= control target key end

     0   :  { %10 = vsyncpa [#allocation3], 0  ;;  %s332_s0 = inlined_call_operand.hbm [shape: f32[16,32], index: 0, kind: input, shape index: {}]   ;;  %s333_s1 = inlined_call_operand.hbm [shape: f32[32,128], index: 1, kind: input, shape index: {}]   ;;  %s334_s2 = inlined_call_operand.vmem [shape: f32[1,128], index: 2, kind: input, shape index: {}]   ;;  %s335_s3 = inlined_call_operand.vmem [shape: f32[1,128], index: 3, kind: input, shape index: {}]   ;;  %s336_s4 = inlined_call_operand.vmem [shape: f32[1,128], index: 4, kind: input, shape index: {}]   ;;  %s337_s5 = inlined_call_operand.hbm [shape: f32[16,128], index: 5, kind: output, shape index: {}]  }
   0x1   :  { %11 = vsyncpa [#allocation6], 0 }
   0x2   :  { %12 = vsyncpa [#allocation4], 0  ;;  %s17_s20 = sshll.u32 %s332_s0, 4  ;;  %s270_s21 = smov [#allocation2]   ;;  %s18_s20 = int_to_ptr.hbm [resolvable:$true] %s17_s20 }
   0x3   :  { %s19_s22 = sshll.u32 %s270_s21, 4  ;;  %s30_s25 = sshll.u32 %s333_s1, 4  ;;  %s20_s22 = int_to_ptr.vmem [resolvable:$true] %s19_s22  ;;  %s31_s25 = int_to_ptr.hbm [resolvable:$true] %s30_s25 }
   0x4   :  { %s271_s26 = smov 128   ;;  %s272_s27 = smov 8  }
   0x5   :  { %25 = dma.hbm_to_vmem [thread:$0]  %s18_s20, 256, %s20_s22, [#allocation3], %s271_s26, %s271_s26, %s272_s27  }
   0x6   :  { %s273_s28 = smov [#allocation5]  }
   0x7   :  { %s32_s29 = sshll.u32 %s273_s28, 4  ;;  %s33_s29 = int_to_ptr.vmem [resolvable:$true] %s32_s29 }
   0x8   :  { %38 = dma.hbm_to_vmem [thread:$0]  %s31_s25, 512, %s33_s29, [#allocation6], %s271_s26, %s271_s26, %s272_s27  }
   0x9   :  { %264 = dma.done.wait [#allocation3], 256  }
   0xa   :  { %265 = vsyncadd [#allocation3], 4294967040 }
   0xb   :  { %266 = dma.done.wait [#allocation6], 512  }
   0xc   :  { %267 = vsyncadd [#allocation6], 4294966784  ;;  %v58_v0 = vld [vmem:[#allocation5 + $0x18] sm:$0xff]  ;;  %v57_v1 = vld [vmem:[#allocation5 + $0x10] sm:$0xff]  ;;  %vm63_vm0 = vcmask 261120   ;;  %v101_v11 = vlaneseq  ;;  %s160_s11 = sshll.u32 %s337_s5, 4  ;;  %s161_s11 = int_to_ptr.hbm [resolvable:$true] %s160_s11 }
   0xd   :  { %82 = vmatpush.msra.mxu0 %v58_v0  ;;  %176 = vmatpush.msra.mxu1 %v58_v0  ;;  %v56_v2 = vld [vmem:[#allocation5 + $0x8] sm:$0xff]  ;;  %v55_v3 = vld [vmem:[#allocation5] sm:$0xff]  ;;  %v53_v4 = vld [vmem:[#allocation2] sm:$0xff] }
   0xe   :  { %v54_v5 = vld [vmem:[#allocation2 + $0x8] sm:$0xff]  ;;  %v185_v6 = vld [vmem:[%s334_s2] ss:$0 sm:$0xff]  ;;  %v102_v12 = vand.u32 127, %v101_v11 }
   0xf   :  { %83 = vmatpush.msra.mxu0 %v57_v1  ;;  %177 = vmatpush.msra.mxu1 %v57_v1  ;;  %v186_v37 = vld [vmem:[%s335_s3] ss:$0 sm:$0xff]  ;;  %s274_s3 = smov [#allocation7]  }
  0x10   :  { %vm103_vm1 = vcmp.lt.s32.totalorder %v102_v12, 32  ;;  %v187_v41 = vld [vmem:[%s336_s4] ss:$0 sm:$0xff]  ;;  %s158_s8 = sshll.u32 %s274_s3, 4  ;;  %s159_s8 = int_to_ptr.vmem [resolvable:$true] %s158_s8 }
  0x11   :  { %84 = vmatpush.msra.mxu0 %v56_v2  ;;  %178 = vmatpush.msra.mxu1 %v56_v2 }
  0x13   :  { %85 = vmatpush.msra.mxu0 %v55_v3  ;;  %179 = vmatpush.msra.mxu1 %v55_v3 }
  0x14   :  { %174 = vmatmul.msk.f32.vlgmr.msra.gmra.mxu0 %vm63_vm0, %v53_v4  ;;  %175 = vmatmul.msk.f32.vlgmr.msra.gmra.mxu1 %vm63_vm0, %v54_v5 }
  0x91   :  { %v87_v7 = vpop.f32.mrf.mxu0  ;;  %v90_v9 = vpop.f32.mrf.mxu1 }
  0x92   :  { %v88_v8 = vadd.f32 %v185_v6, %v87_v7  ;;  %v91_v10 = vadd.f32 %v185_v6, %v90_v9 }
  0x94   :  { %93 = vadd.xlane.f32.xlu0 %v88_v8 }
  0x9c   :  { %95 = vadd.xlane.f32.xlu0 %v91_v10 }
 0x107   :  { %v94_v13 = vpop.xlane.xlu0 %93 }
 0x108   :  { %v97_v14 = vmul.f32 0.03125, %v94_v13 }
 0x10a   :  { %v99_v15 = vsub.f32 %v88_v8, %v97_v14 }
 0x10c   :  { %v104_v16 = vsel %vm103_vm1, %v99_v15, 0.0 }
 0x10d   :  { %v106_v17 = vmul.f32 %v104_v16, %v104_v16 }
 0x10f   :  { %108 = vadd.xlane.f32.xlu1 %v106_v17  ;;  %v96_v18 = vpop.xlane.xlu0 %95 }
 0x110   :  { %v98_v19 = vmul.f32 0.03125, %v96_v18 }
 0x112   :  { %v100_v20 = vsub.f32 %v91_v10, %v98_v19 }
 0x114   :  { %v105_v21 = vsel %vm103_vm1, %v100_v20, 0.0 }
 0x115   :  { %v107_v22 = vmul.f32 %v105_v21, %v105_v21 }
 0x117   :  { %110 = vadd.xlane.f32.xlu1 %v107_v22 }
 0x182   :  { %v109_v23 = vpop.xlane.xlu1 %108 }
 0x183   :  { %v112_v24 = vmul.f32 0.03125, %v109_v23 }
 0x185   :  { %v114_v25 = vadd.f32 1e-05, %v112_v24 }
 0x187   :  { %188 = vrsqrt.f32 %v114_v25  ;;  %vm122_vm3 = vweird.f32 %v114_v25 }
 0x18a   :  { %v111_v26 = vpop.xlane.xlu1 %110 }
 0x18b   :  { %v113_v27 = vmul.f32 0.03125, %v111_v26 }
 0x18d   :  { %v189_v28 = vpop.eup %188  ;;  %v115_v29 = vadd.f32 1e-05, %v113_v27 }
 0x18e   :  { %v117_v30 = vmul.f32 %v189_v28, %v114_v25  ;;  %vm123_vm2 = vweird.f32 %v189_v28 }
 0x18f   :  { %190 = vrsqrt.f32 %v115_v29  ;;  %vm124_vm4 = vmor %vm122_vm3, %vm123_vm2  ;;  %vm132_vm6 = vweird.f32 %v115_v29 }
 0x190   :  { %v118_v31 = vmul.f32 %v189_v28, %v117_v30 }
 0x192   :  { %v119_v32 = vmul.f32 0.5, %v118_v31 }
 0x194   :  { %v120_v33 = vsub.f32 1.5, %v119_v32 }
 0x195   :  { %v191_v34 = vpop.eup %190 }
 0x196   :  { %v121_v35 = vmul.f32 %v189_v28, %v120_v33  ;;  %v127_v36 = vmul.f32 %v191_v34, %v115_v29  ;;  %vm133_vm5 = vweird.f32 %v191_v34 }
 0x197   :  { %vm134_vm7 = vmor %vm132_vm6, %vm133_vm5 }
 0x198   :  { %v125_v38 = vsel %vm124_vm4, %v189_v28, %v121_v35  ;;  %v128_v39 = vmul.f32 %v191_v34, %v127_v36 }
 0x199   :  { %v136_v40 = vmul.f32 %v125_v38, %v99_v15 }
 0x19a   :  { %v129_v42 = vmul.f32 0.5, %v128_v39 }
 0x19b   :  { %v142_v43 = vmul.f32 %v186_v37, %v136_v40 }
 0x19c   :  { %v130_v44 = vsub.f32 1.5, %v129_v42 }
 0x19d   :  { %v148_v45 = vadd.f32 %v187_v41, %v142_v43 }
 0x19e   :  { %v131_v46 = vmul.f32 %v191_v34, %v130_v44 }
 0x19f   :  { %v150_v47 = vmax.f32 %v148_v45, 0.0 }
 0x1a0   :  { %v135_v48 = vsel %vm134_vm7, %v191_v34, %v131_v46 }
 0x1a1   :  { %v137_v49 = vmul.f32 %v135_v48, %v100_v20  ;;  %152 = vst [vmem:[#allocation7] sm:$0xff] %v150_v47 }
 0x1a3   :  { %v143_v50 = vmul.f32 %v186_v37, %v137_v49 }
 0x1a5   :  { %v149_v51 = vadd.f32 %v187_v41, %v143_v50 }
 0x1a7   :  { %v151_v52 = vmax.f32 %v149_v51, 0.0 }
 0x1a9   :  { %153 = vst [vmem:[#allocation7 + $0x8] sm:$0xff] %v151_v52 }
 0x1aa   :  { %166 = dma.vmem_to_hbm [thread:$0]  %s159_s8, 256, %s161_s11, [#allocation4], %s271_s26, %s271_s26, %s272_s27  }
 0x1ab   :  { %268 = dma.done.wait [#allocation4], 256  }
 0x1ac   :  { %269 = vsyncadd [#allocation4], 4294967040 }
 0x1ad   :  { %171 = vsyncpa [#allocation3], 1 }
 0x1ae   :  { %172 = vsyncpa [#allocation6], 1 }
 0x1af   :  { %173 = vsyncpa [#allocation4], 1 }

</bundles_post_ra>
